<compile_context>
chip_gen: v7x
topology: tpu7x:2x2x1
jax: 0.10.0
libtpu: 0.0.40
codegen_flags: <defaults>
</compile_context>

<pallas_src>
import functools

import jax
import jax.numpy as jnp
from jax.experimental import pallas as pl
from jax.experimental.pallas import tpu as pltpu


def residual_ff_kernel(x_ref, w1_ref, b1_ref, w2_ref, b2_ref, o_ref):
    x = x_ref[...]                      # (tm, D) token tile, native dtype

    def mxu(v):
        # MXU is bf16-native on v5e/v6e/v7x; f32 matmul runs as a slow multi-pass.
        return v.astype(jnp.bfloat16) if v.dtype == jnp.float32 else v

    # Linear 1: bf16 (or native narrow-dtype) MXU feed, f32 accumulation.
    h = jnp.dot(mxu(x), mxu(w1_ref[...]), preferred_element_type=jnp.float32)
    h = h + b1_ref[...].astype(jnp.float32)      # (1, H) lane-broadcast bias
    h = jax.nn.gelu(h)                           # transcendentals -> EUP, in f32

    # Linear 2.
    y = jnp.dot(mxu(h), mxu(w2_ref[...]), preferred_element_type=jnp.float32)
    y = y + b2_ref[...].astype(jnp.float32)

    # Residual add in f32, single cast to the output dtype.
    o_ref[...] = (y + x.astype(jnp.float32)).astype(o_ref.dtype)


def _resident_spec(shape):
    # Constant index_map => operand stays resident in VMEM; single buffer (no refetch).
    index_map = lambda i: (0,) * len(shape)
    try:
        return pl.BlockSpec(shape, index_map, pipeline_mode=pl.Buffered(1))
    except TypeError:  # older jax without pipeline_mode: fall back to default buffering
        return pl.BlockSpec(shape, index_map)


@functools.partial(jax.jit, static_argnames=("tm",))
def residual_feedforward(x, w1, b1, w2, b2, *, tm=512):
    B, N, D = x.shape
    H = w1.shape[1]
    tokens = B * N

    # ---- token tile -----------------------------------------------------------
    if tokens <= 8:
        tm_eff = tokens                               # single full-extent block
    else:
        tm_eff = min(tm, ((tokens + 7) // 8) * 8)     # sublane multiple
        tm_eff = max(8, (tm_eff // 8) * 8)
        if -(-tokens // tm_eff) < 2:
            # Keep >= 2 grid steps so both v7x TensorCores get work.
            half = (tokens + 1) // 2
            tm_eff = max(8, ((half + 7) // 8) * 8)
    grid_m = -(-tokens // tm_eff)

    x2d = x.reshape(tokens, D)                        # ragged tail handled by Pallas
    b1_2d = b1.reshape(1, H)
    b2_2d = b2.reshape(1, D)

    # ---- per-generation VMEM budget -------------------------------------------
    try:
        vmem_cap = int(pltpu.get_tpu_info().vmem_capacity_bytes)
    except Exception:
        vmem_cap = 64 * 1024 * 1024                   # conservative (v7x-sized) fallback
    vmem_ceiling = int(vmem_cap * 0.8)                # headroom for Mosaic scratch/sems

    isz_x = x.dtype.itemsize
    isz_w = w1.dtype.itemsize
    working_set = (
        2 * tm_eff * D * isz_x                        # x tile, double-buffered
        + 2 * tm_eff * D * isz_x                      # out tile, double-buffered
        + D * H * isz_w + H * D * isz_w               # W1 + W2, single-buffered
        + (H + D) * isz_w                             # biases
        + tm_eff * H * 4 + tm_eff * D * 4             # f32 intermediates
        + (tm_eff * D + tm_eff * H + 2 * D * H) * 2   # bf16 MXU operand copies
    )
    vmem_limit = int(min(vmem_ceiling,
                         max(int(working_set * 1.25) + (4 << 20), 16 << 20)))
    # TODO(synk): for ViT-g/H-class FFNs (H >= 6144 with f32 weights) on v7x, add a
    # hidden-dim reduction grid axis streaming W1/W2 panels instead of full residency.

    cost = pl.CostEstimate(
        flops=4 * tokens * D * H,                     # two matmuls: 2*M*K*N each
        transcendentals=tokens * H,                   # GELU
        bytes_accessed=(2 * tokens * D * isz_x        # x in + out
                        + 2 * D * H * isz_w           # weights
                        + (H + D) * isz_w),           # biases
    )

    out2d = pl.pallas_call(
        residual_ff_kernel,
        out_shape=jax.ShapeDtypeStruct((tokens, D), x.dtype),
        grid_spec=pltpu.PrefetchScalarGridSpec(
            num_scalar_prefetch=0,
            grid=(grid_m,),
            in_specs=[
                pl.BlockSpec((tm_eff, D), lambda i: (i, 0)),   # x tile (streamed)
                _resident_spec((D, H)),                         # W1 (resident)
                _resident_spec((1, H)),                         # b1
                _resident_spec((H, D)),                         # W2 (resident)
                _resident_spec((1, D)),                         # b2
            ],
            out_specs=pl.BlockSpec((tm_eff, D), lambda i: (i, 0)),
        ),
        compiler_params=pltpu.CompilerParams(
            dimension_semantics=("parallel",),
            vmem_limit_bytes=vmem_limit,
        ),
        cost_estimate=cost,
    )(x2d, w1, b1_2d, w2, b2_2d)

    return out2d.reshape(B, N, D)


def reference(x, w1, b1, w2, b2):
    h = jax.nn.gelu(jnp.einsum("bnd,dh->bnh", x, w1) + b1)
    y = jnp.einsum("bnh,hd->bnd", h, w2) + b2
    return y + x


if __name__ == "__main__":
    # Small shapes: batch=2, seq=8, dim=32, hidden=64
    B, N, D, H = 2, 8, 32, 64
    key = jax.random.PRNGKey(0)
    kx, k1, k2, k3, k4 = jax.random.split(key, 5)

    x = jax.random.normal(kx, (B, N, D), dtype=jnp.float32)
    # Deterministic parameter init (synthetic, not a checkpoint load)
    w1 = jax.random.normal(k1, (D, H), dtype=jnp.float32) * 0.02
    b1 = jax.random.normal(k2, (H,), dtype=jnp.float32) * 0.01
    w2 = jax.random.normal(k3, (H, D), dtype=jnp.float32) * 0.02
    b2 = jax.random.normal(k4, (D,), dtype=jnp.float32) * 0.01

    out = jax.block_until_ready(residual_feedforward(x, w1, b1, w2, b2))
    ref = reference(x, w1, b1, w2, b2)
    assert out.shape == x.shape and out.dtype == x.dtype
    # bf16 MXU feed (f32 accumulation) -> allow bf16-level tolerance vs f32 reference.
    assert jnp.allclose(out, ref, atol=1e-2, rtol=1e-2), "mismatch vs reference"

    # Ragged token count (exercises the partial-last-tile path, e.g. ViT's 197 tokens).
    x_odd = jax.random.normal(kx, (2, 5, D), dtype=jnp.float32)
    out_odd = jax.block_until_ready(residual_feedforward(x_odd, w1, b1, w2, b2))
    ref_odd = reference(x_odd, w1, b1, w2, b2)
    assert jnp.allclose(out_odd, ref_odd, atol=1e-2, rtol=1e-2), "ragged mismatch"

    print("KERNEL_OK")
</pallas_src>

<mosaic_0001>
module attributes {stable_mosaic.version = 11 : i64} {
  func.func @residual_ff_kernel(%arg0: i32, %arg1: memref<8x32xf32, #tpu.memory_space<vmem>>, %arg2: memref<32x64xf32, #tpu.memory_space<vmem>>, %arg3: memref<1x64xf32, #tpu.memory_space<vmem>>, %arg4: memref<64x32xf32, #tpu.memory_space<vmem>>, %arg5: memref<1x32xf32, #tpu.memory_space<vmem>>, %arg6: memref<8x32xf32, #tpu.memory_space<vmem>>) attributes {dimension_semantics = [#tpu.dimension_semantics<parallel>], iteration_bounds = array<i64: 2>, scalar_prefetch = 0 : i64, scratch_operands = 0 : i64, tpu.core_type = #tpu.core_type<tc>, window_params = [{transform_indices = @transform_0, window_bounds = array<i64: 8, 32>}, {pipeline_mode = #tpu.pipeline_mode<synchronous>, transform_indices = @transform_1, window_bounds = array<i64: 32, 64>}, {pipeline_mode = #tpu.pipeline_mode<synchronous>, transform_indices = @transform_2, window_bounds = array<i64: 1, 64>}, {pipeline_mode = #tpu.pipeline_mode<synchronous>, transform_indices = @transform_3, window_bounds = array<i64: 64, 32>}, {pipeline_mode = #tpu.pipeline_mode<synchronous>, transform_indices = @transform_4, window_bounds = array<i64: 1, 32>}, {transform_indices = @transform_5, window_bounds = array<i64: 8, 32>}]} {
    %c0 = arith.constant 0 : index
    %c0_0 = arith.constant 0 : index
    %0 = vector.load %arg1[%c0, %c0_0] : memref<8x32xf32, #tpu.memory_space<vmem>>, vector<8x32xf32>
    %1 = arith.truncf %0 : vector<8x32xf32> to vector<8x32xbf16>
    %c0_1 = arith.constant 0 : index
    %c0_2 = arith.constant 0 : index
    %2 = vector.load %arg2[%c0_1, %c0_2] : memref<32x64xf32, #tpu.memory_space<vmem>>, vector<32x64xf32>
    %3 = arith.truncf %2 : vector<32x64xf32> to vector<32x64xbf16>
    %cst = arith.constant dense<0.000000e+00> : vector<8x64xf32>
    %4 = tpu.matmul %1, %3, %cst {dimension_numbers = #tpu.dot_dimension_numbers<[1], [0], [0], [1], [0, 0, 1, 1], [], []>} : vector<8x32xbf16>, vector<32x64xbf16>, vector<8x64xf32> -> vector<8x64xf32>
    %c0_3 = arith.constant 0 : index
    %c0_4 = arith.constant 0 : index
    %5 = vector.load %arg3[%c0_3, %c0_4] : memref<1x64xf32, #tpu.memory_space<vmem>>, vector<1x64xf32>
    %6 = vector.broadcast %5 : vector<1x64xf32> to vector<8x64xf32>
    %7 = arith.addf %4, %6 : vector<8x64xf32>
    %8 = arith.mulf %7, %7 : vector<8x64xf32>
    %9 = arith.mulf %7, %8 : vector<8x64xf32>
    %cst_5 = arith.constant 4.471500e-02 : f32
    %10 = vector.broadcast %cst_5 : f32 to vector<8x64xf32>
    %11 = arith.mulf %10, %9 : vector<8x64xf32>
    %12 = arith.addf %7, %11 : vector<8x64xf32>
    %cst_6 = arith.constant 0.797884583 : f32
    %13 = vector.broadcast %cst_6 : f32 to vector<8x64xf32>
    %14 = arith.mulf %13, %12 : vector<8x64xf32>
    %15 = math.tanh %14 : vector<8x64xf32>
    %cst_7 = arith.constant 1.000000e+00 : f32
    %16 = vector.broadcast %cst_7 : f32 to vector<8x64xf32>
    %17 = arith.addf %16, %15 : vector<8x64xf32>
    %cst_8 = arith.constant 5.000000e-01 : f32
    %18 = vector.broadcast %cst_8 : f32 to vector<8x64xf32>
    %19 = arith.mulf %18, %17 : vector<8x64xf32>
    %20 = arith.mulf %7, %19 : vector<8x64xf32>
    %21 = arith.truncf %20 : vector<8x64xf32> to vector<8x64xbf16>
    %c0_9 = arith.constant 0 : index
    %c0_10 = arith.constant 0 : index
    %22 = vector.load %arg4[%c0_9, %c0_10] : memref<64x32xf32, #tpu.memory_space<vmem>>, vector<64x32xf32>
    %23 = arith.truncf %22 : vector<64x32xf32> to vector<64x32xbf16>
    %cst_11 = arith.constant dense<0.000000e+00> : vector<8x32xf32>
    %24 = tpu.matmul %21, %23, %cst_11 {dimension_numbers = #tpu.dot_dimension_numbers<[1], [0], [0], [1], [0, 0, 1, 1], [], []>} : vector<8x64xbf16>, vector<64x32xbf16>, vector<8x32xf32> -> vector<8x32xf32>
    %c0_12 = arith.constant 0 : index
    %c0_13 = arith.constant 0 : index
    %25 = vector.load %arg5[%c0_12, %c0_13] : memref<1x32xf32, #tpu.memory_space<vmem>>, vector<1x32xf32>
    %26 = vector.broadcast %25 : vector<1x32xf32> to vector<8x32xf32>
    %27 = arith.addf %24, %26 : vector<8x32xf32>
    %28 = arith.addf %27, %0 : vector<8x32xf32>
    %c0_14 = arith.constant 0 : index
    %c0_15 = arith.constant 0 : index
    %29 = vector.load %arg6[%c0_14, %c0_15] : memref<8x32xf32, #tpu.memory_space<vmem>>, vector<8x32xf32>
    tpu.vector_store %arg6[%c0_14, %c0_15], %28 {strides = array<i32>} : memref<8x32xf32, #tpu.memory_space<vmem>>, vector<8x32xf32>,
    return
  }
  func.func @transform_0(%arg0: i32) -> (i32, i32) {
    %c0_i32 = arith.constant 0 : i32
    %c0_i32_0 = arith.constant 0 : i32
    return %arg0, %c0_i32 : i32, i32
  }
  func.func @transform_1(%arg0: i32) -> (i32, i32) {
    %c0_i32 = arith.constant 0 : i32
    %c0_i32_0 = arith.constant 0 : i32
    %c0_i32_1 = arith.constant 0 : i32
    return %c0_i32, %c0_i32_0 : i32, i32
  }
  func.func @transform_2(%arg0: i32) -> (i32, i32) {
    %c0_i32 = arith.constant 0 : i32
    %c0_i32_0 = arith.constant 0 : i32
    %c0_i32_1 = arith.constant 0 : i32
    return %c0_i32, %c0_i32_0 : i32, i32
  }
  func.func @transform_3(%arg0: i32) -> (i32, i32) {
    %c0_i32 = arith.constant 0 : i32
    %c0_i32_0 = arith.constant 0 : i32
    %c0_i32_1 = arith.constant 0 : i32
    return %c0_i32, %c0_i32_0 : i32, i32
  }
  func.func @transform_4(%arg0: i32) -> (i32, i32) {
    %c0_i32 = arith.constant 0 : i32
    %c0_i32_0 = arith.constant 0 : i32
    %c0_i32_1 = arith.constant 0 : i32
    return %c0_i32, %c0_i32_0 : i32, i32
  }
  func.func @transform_5(%arg0: i32) -> (i32, i32) {
    %c0_i32 = arith.constant 0 : i32
    %c0_i32_0 = arith.constant 0 : i32
    return %arg0, %c0_i32 : i32, i32
  }
}

</mosaic_0001>

<bundles_post_ra>
// kernel: residual_feedforward.1
= control target key start
LH: loop header
LB: loop body
LE: loop exit
PB: predicated region body
PF: predicated region fallthrough
CT: control target
= control target key end

     0   :  { %10 = vsyncpa [#allocation3], 0  ;;  %s754_s0 = inlined_call_operand.vmem [shape: f32[16,32], index: 0, kind: input, shape index: {}]   ;;  %s755_s1 = inlined_call_operand.vmem [shape: f32[32,64], index: 1, kind: input, shape index: {}]   ;;  %s756_s2 = inlined_call_operand.vmem [shape: f32[1,64], index: 2, kind: input, shape index: {}]   ;;  %s757_s3 = inlined_call_operand.vmem [shape: f32[64,32], index: 3, kind: input, shape index: {}]   ;;  %s758_s4 = inlined_call_operand.vmem [shape: f32[1,32], index: 4, kind: input, shape index: {}]   ;;  %s759_s5 = inlined_call_operand.hbm [shape: f32[16,32], index: 5, kind: output, shape index: {}]  }
   0x1   :  { %12 = vsyncpa [#allocation3 + $0x1], 0  ;;  %s610_s18 = smov 0   ;;  %s612_s19 = smov 0  }
   0x2   :  { %s614_s20 = smov 0   ;;  %s616_s21 = smov 0  }
   0x3 LB: > { %s631_s22 = sadd.s32 4294967295, %s575_s21   ;;  %s428_s23 = sadd.s32 4294967294, %s575_s21   ;;  %s575_s21 = sphi %s616_s21, %s765_s21   ;;  %s571_s20 = sphi %s614_s20, %s764_s20   ;;  %s567_s19 = sphi %s612_s19, %s763_s19   ;;  %s563_s18 = sphi %s610_s18, %s762_s18  }
   0x4   : > { %s635_s24 = sadd.s32 1, %s575_s21   ;;  %s135_s25 = sadd.s32 1, %s571_s20 }
   0x5   : > { %s132_s26 = ssub.s32 %s575_s21, %s635_s24  ;;  %p145_p0 = scmp.ne.s32.totalorder %s571_s20, %s567_s19 }
   0x6   : > { %p133_p1 = scmp.eq.s32.totalorder %s132_s26, 0  ;;  %p146_p2 = scmp.eq.s32.totalorder %s631_s22, 1 }
   0x7   : > { %p151_p3 = scmp.ne.s32.totalorder %s567_s19, %s563_s18  ;;  %p152_p4 = scmp.eq.s32.totalorder %s428_s23, 1 }
   0x8   : > { %s646_s27 = scalar_select %p133_p1, %s571_s20, %s135_s25  }
   0x9   : > { %p648_p5 = por %p146_p2, %p145_p0  ;;  %p652_p6 = por %p152_p4, %p151_p3 }
   0xa   : > { %p431_p7 = scmp.ge.s32.totalorder %s575_s21, 1  ;;  %p189_p8 = scmp.lt.s32.totalorder %s575_s21, 3 }
   0xc   : > { %p190_p9 = pnand %p431_p7, %p189_p8 }
   0xd   : > { %v223_v0 = vld [vmem:[%s755_s1] sm:$0xff] (!%p190_p9)  ;;  %v224_v1 = vld [vmem:[%s755_s1 + $0x8] sm:$0xff] (!%p190_p9)  ;;  %v225_v2 = vld [vmem:[%s755_s1 + $0x10] sm:$0xff] (!%p190_p9)  ;;  %p216_p10 = scmp.lt.s32.totalorder (!%p190_p9), %s631_s22, 1  ;;  %v577_v3 = vmov (!%p190_p9), 0.0   ;;  %vm578_vm0 = vmmov (!%p190_p9), 0  }
   0xe   : > { %193 = sbr.rel (%p190_p9) target bundleno = 501 (0x1f5), region = 40  ;;  %450 = vmatprep.subr.bf16.mxu0 (!%p190_p9), %v577_v3  ;;  %v227_v4 = vpack.c.bf16 (!%p190_p9), %v224_v1, %v223_v0  ;;  %v226_v5 = vld [vmem:[%s755_s1 + $0x18] sm:$0xff] (!%p190_p9)  ;;  %454 = vmatprep.mubr.msk.bf16.mxu0 (!%p190_p9), %vm578_vm0, %v577_v3  ;;  %vm236_vm1 = vcmask (!%p190_p9), 261120   ;;  %v290_v9 = vld [vmem:[%s757_s3] sm:$0xff] (!%p190_p9)  ;;  %v291_v10 = vld [vmem:[%s757_s3 + $0x8] sm:$0xff] (!%p190_p9)  ;;  %vm309_vm2 = vcmask (!%p190_p9), 523264  }
   0xf   : > { %458 = vmatprep.subr.bf16.mxu1 (!%p190_p9), %v577_v3  ;;  %466 = vmatprep.mubr.msk.bf16.mxu1 (!%p190_p9), %vm578_vm0, %v577_v3  ;;  %v228_v6 = vpack.c.bf16 (!%p190_p9), %v226_v5, %v225_v2  ;;  %v292_v11 = vld [vmem:[%s757_s3 + $0x10] sm:$0xff] (!%p190_p9)  ;;  %v298_v12 = vpack.c.bf16 (!%p190_p9), %v291_v10, %v290_v9  ;;  %v293_v13 = vld [vmem:[%s757_s3 + $0x18] sm:$0xff] (!%p190_p9)  ;;  %v294_v15 = vld [vmem:[%s757_s3 + $0x20] sm:$0xff] (!%p190_p9)  ;;  %s213_s26 = sand.u32 (!%p190_p9), 1, %s567_s19   ;;  %s439_s8 = sshll.u32 (!%p190_p9), %s631_s22, 7 }
  0x10   : > { %451 = vmatpush3.bf16.msra.mxu0 (!%p190_p9), %v227_v4  ;;  %v299_v14 = vpack.c.bf16 (!%p190_p9), %v293_v13, %v292_v11  ;;  %v295_v16 = vld [vmem:[%s757_s3 + $0x28] sm:$0xff] (!%p190_p9)  ;;  %v296_v18 = vld [vmem:[%s757_s3 + $0x30] sm:$0xff] (!%p190_p9)  ;;  %v297_v19 = vld [vmem:[%s757_s3 + $0x38] sm:$0xff] (!%p190_p9)  ;;  %s432_s30 = sshll.u32 (!%p190_p9), %s213_s26, 3  ;;  %s579_s15 = smov (!%p190_p9), [#allocation2]  }
  0x11   : > { %452 = vmatprep.subr.bf16.mxu0 (!%p190_p9), %v577_v3  ;;  %459 = vmatpush3.bf16.msra.mxu1 (!%p190_p9), %v298_v12  ;;  %v300_v17 = vpack.c.bf16 (!%p190_p9), %v295_v16, %v294_v15  ;;  %v301_v20 = vpack.c.bf16 (!%p190_p9), %v297_v19, %v296_v18  ;;  %v434_v21 = vld [vmem:[%s756_s2] ss:$0 sm:$0xff] (!%p190_p9)  ;;  %s215_s9 = scalar_lea.vmem (!%p190_p9), [#allocation2], %s432_s30  ;;  %s517_s16 = sshll.u32 (!%p190_p9), %s579_s15, 4  ;;  %s518_s16 = int_to_ptr.vmem [resolvable:$false] %s517_s16 }
  0x12   : > { %460 = vmatprep.subr.bf16.mxu1 (!%p190_p9), %v577_v3  ;;  %v436_v37 = vld [vmem:[%s758_s4] ss:$0 sm:$0xff] (!%p190_p9)  ;;  %s369_s10 = sshll.u32 (!%p190_p9), %s215_s9, 4  ;;  %s713_s10 = int_to_ptr.vmem [resolvable:$true] %s369_s10 }
  0x13   : > { %p520_p0 = scmp.lt.s32.totalorder (!%p190_p9), %s713_s10, %s518_s16 }
  0x14   : > { %453 = vmatpush3.bf16.msra.mxu0 (!%p190_p9), %v228_v6 }
  0x15   : > { %s217_s13 = scalar_select %p216_p10, %s631_s22, 1  ;;  %461 = vmatpush3.bf16.msra.mxu1 %v299_v14 }
  0x16   : > { %462 = vmatprep.subr.bf16.mxu1 %v577_v3  ;;  %s356_s22 = scalar_lea.sflag [#allocation3], %s213_s26 }
  0x17   : > { %s433_s14 = sshll.u32 %s217_s13, 3  ;;  %s711_s13 = scalar_lea.hbm %s759_s5, %s439_s8 }
  0x18   : > { %s219_s17 = scalar_lea.vmem %s754_s0, %s433_s14  ;;  %s513_s14 = scalar_lea.vmem %s713_s10, 128 }
  0x19   : > { %v221_v7 = vld [vmem:[%s219_s17] sm:$0xff]  ;;  %463 = vmatpush3.bf16.msra.mxu1 %v300_v17  ;;  %p514_p11 = scmp.ne.s32.totalorder %s713_s10, %s513_s14  ;;  %s519_s17 = scalar_lea.vmem %s518_s16, 256 }
  0x1a   : > { %v222_v8 = vpack.c.bf16 %v221_v7, %v221_v7  ;;  %464 = vmatprep.subr.bf16.mxu1 %v577_v3  ;;  %p521_p1 = scmp.lt.s32.totalorder %s519_s17, %s513_s14 }
  0x1b   : > { %p515_p12 = pnand %p514_p11, %p648_p5 }
  0x1c   : > { %455 = vmatmul.mubr.msk.bf16.vlgmr.msra.gmra.mrb[0].mxu0 %vm236_vm1, %v222_v8  ;;  %p522_p2 = por %p521_p1, %p520_p0 }
  0x1d   : > { %465 = vmatpush3.bf16.msra.mxu1 %v301_v20  ;;  %p516_p13 = pneg %p515_p12 }
  0x1f   : > { %p523_p3 = pnand %p522_p2, %p516_p13 }
  0xef   : > { %v274_v22 = vpop.f32.mrb[0].mxu0 }
  0xf0   : > { %v275_v23 = vadd.f32 %v434_v21, %v274_v22  ;;  %v456_v24 = vpop.f32.mrb[1].mxu0 }
  0xf1   : > { %v277_v25 = vpop.f32.mrb[2].mxu0 }
  0xf2   : > { %v280_v26 = vmul.f32 %v275_v23, %v275_v23  ;;  %v457_v27 = vpop.f32.mrb[3].mxu0 }
  0xf4   : > { %v281_v28 = vmul.f32 %v280_v26, %v275_v23 }
  0xf6   : > { %v282_v29 = vmul.f32 0.044715, %v281_v28 }
  0xf8   : > { %v283_v30 = vadd.f32 %v282_v29, %v275_v23 }
  0xfa   : > { %v284_v31 = vmul.f32 0.7978846, %v283_v30 }
  0xfc   : > { %511 = vtanh.f32 %v284_v31 }
 0x106   : > { %v512_v32 = vpop.eup %511 }
 0x107   : > { %v286_v33 = vadd.f32 1.0, %v512_v32 }
 0x109   : > { %v287_v34 = vmul.f32 0.5, %v286_v33 }
 0x10b   : > { %v288_v35 = vmul.f32 %v287_v34, %v275_v23 }
 0x10d   : > { %v289_v36 = vpack.c.bf16 %v288_v35, %v288_v35 }
 0x10f   : > { %467 = vmatmul.mubr.msk.bf16.vlgmr.msra.gmra.mrb[0].mxu1 %vm309_vm2, %v289_v36 }
 0x1e2   : > { %v347_v38 = vpop.f32.mrb[0].mxu1 }
 0x1e3   : > { %v348_v39 = vadd.f32 %v436_v37, %v347_v38  ;;  %v468_v40 = vpop.f32.mrb[1].mxu1 }
 0x1e4   : > { %v350_v41 = vpop.f32.mrb[2].mxu1 }
 0x1e5   : > { %v353_v42 = vadd.f32 %v348_v39, %v221_v7  ;;  %v469_v43 = vpop.f32.mrb[3].mxu1 }
 0x1e7   : > { %354 = vst.msk [vmem:[%s215_s9] sm:$0xff] %vm236_vm1, %v353_v42 }
 0x1e8   : > { %526 = shalt.err (!%p523_p3)
}
 0x1e9   : > { %s527_s23 = scalar_lea.hbm %s711_s13, 128  ;;  %s531_s30 = scalar_lea.hbm %s759_s5, 256 }
 0x1ea   : > { %p528_p4 = scmp.ne.s32.totalorder %s711_s13, %s527_s23  ;;  %p532_p9 = scmp.lt.u32.totalorder %s711_s13, %s759_s5 }
 0x1eb   : > { %p533_p10 = scmp.lt.u32.totalorder %s531_s30, %s527_s23  ;;  %p535_p12 = scmp.lt.u32.totalorder %s527_s23, %s711_s13 }
 0x1ec   : > { %p529_p7 = pnand %p528_p4, %p648_p5 }
 0x1ed   : > { %p534_p11 = por %p533_p10, %p532_p9 }
 0x1ee   : > { %p530_p8 = pneg %p529_p7 }
 0x1ef   : > { %p536_p13 = por %p535_p12, %p534_p11 }
 0x1f1   : > { %p537_p0 = pnand %p536_p13, %p530_p8 }
 0x1f3   : > { %540 = shalt.err (!%p537_p0)
}
 0x1f4   : > { %470 = dma.vmem_to_hbm [thread:$0]  (%p648_p5), %s713_s10, 128, %s711_s13, %s356_s22  }
 0x1f5 PF: > { %p476_p1 = scmp.ge.s32.totalorder %s575_s21, 2  ;;  %s381_s8 = sand.u32 1, %s563_s18  }
 0x1f6   : > { %s382_s9 = scalar_lea.sflag [#allocation3], %s381_s8 }
 0x1f7   : > { %p473_p2 = pnand %p476_p1, %p652_p6 }
 0x1f9   : > { %558 = dma.done.wait (!%p473_p2), %s382_s9, 128  }
 0x1fa   : > { %560 = vsyncadd (!%p473_p2), %s382_s9, 4294967168  ;;  %p15_p3 = scmp.ge.s32.totalorder %s635_s24, 4   ;;  %s762_s18 = smov %s567_s19 }
 0x1fb   : > { %s763_s19 = smov %s571_s20  ;;  %s764_s20 = smov %s646_s27 }
 0x1fc   : > { %s765_s21 = smov %s635_s24  ;;  %17 = sbr.rel (!%p15_p3) target bundleno = 3 (0x3), region = 75 }
 0x203   :  { %387 = vsyncpa [#allocation3], 1 }
 0x204   :  { %389 = vsyncpa [#allocation3 + $0x1], 1 }

</bundles_post_ra>
